<compile_context>
chip_gen: v7x
topology: tpu7x:2x2x1
jax: 0.10.0
libtpu: 0.0.40
codegen_flags: <defaults>
</compile_context>

<pallas_src>
import functools

import jax
import jax.numpy as jnp
from jax import lax
from jax.experimental import pallas as pl
from jax.experimental.pallas import tpu as pltpu


def _round_up(x, m):
    return -(-x // m) * m


def _cdiv(a, b):
    return -(-a // b)


def _pick_chunk_rows(t_rows):
    """Largest sub-slice (<=256 rows) that divides t_rows (t_rows % 8 == 0)."""
    if t_rows <= 256:
        return t_rows
    for cand in (256, 128, 64, 32, 16, 8):
        if t_rows % cand == 0:
            return cand
    return t_rows


def _stream_sum_kernel(feat_ref, psum_ref, acc_ref, *, chunk_rows, n_chunks):
    """Streaming f32 sum over the packed-time axis of one feature tile.

    feat_ref : (b_tile, t_rows, lane_w)   lane-dense feature tile (f32 / bf16)
    psum_ref : (1, b_tile, lane_w) f32    per-T-split partial-sum output
    acc_ref  : (b_tile, lane_w)    f32    VMEM accumulator across the t axis
    """
    t = pl.program_id(2)

    @pl.when(t == 0)
    def _init():
        acc_ref[...] = jnp.zeros_like(acc_ref)

    if n_chunks == 1:
        acc_ref[...] += jnp.sum(feat_ref[...].astype(jnp.float32), axis=1)
    else:
        # Chunked in-tile reduction: keeps the cast+add working set small so
        # the VPU stream stays hidden under the feature DMA at large t tiles.
        def body(c, carry):
            start = pl.multiple_of(c * chunk_rows, chunk_rows)
            chunk = feat_ref[:, pl.ds(start, chunk_rows), :].astype(jnp.float32)
            return carry + jnp.sum(chunk, axis=1)

        zero = jnp.zeros(acc_ref.shape, dtype=acc_ref.dtype)
        acc_ref[...] += lax.fori_loop(0, n_chunks, body, zero)

    @pl.when(t == pl.num_programs(2) - 1)
    def _flush():
        psum_ref[0] = acc_ref[...]


def emofilm_forward(features_padded, labels, wc, bc, wm, bm, *,
                    b_tile=8, t_tile=2048, n_splits=2,
                    stream_dtype=jnp.bfloat16):
    """pad_sequence -> Linear(U->H) -> mean over T -> Linear(H->C) -> CE.

    The HBM-bound hot path (sum over T of the features) runs as a Pallas
    streaming kernel; the tiny (B,U)@(U,C) fused head and the cross-entropy
    run as ordinary JAX ops on the (B,U) pooled result.
    """
    B, T, U = features_padded.shape
    C = wm.shape[1]

    LANES = 128
    pack = LANES // U if (U < LANES and LANES % U == 0) else 1
    lane_w = pack * U

    feats = features_padded
    if stream_dtype is not None:
        feats = feats.astype(stream_dtype)          # e.g. bf16 HBM streaming

    # ---- tiling -------------------------------------------------------------
    if B <= 8:
        b_tile = B                                   # full-batch block
    else:
        b_tile = max(8, (min(b_tile, B) // 8) * 8)
    B_pad = _round_up(B, b_tile)

    n_splits = max(1, int(n_splits))                 # parallel T-splits (v7x: 2 TCs)
    Tp_raw = _cdiv(T, pack)                          # packed rows holding real data
    t_rows = min(max(1, t_tile // pack),
                 _round_up(_cdiv(Tp_raw, n_splits), 8))
    t_rows = max(8, _round_up(t_rows, 8))
    Tp_pad = _round_up(Tp_raw, n_splits * t_rows)
    t_tiles = Tp_pad // (n_splits * t_rows)
    T_frames_pad = Tp_pad * pack
    # TODO(synk): bucket T_frames_pad to a few fixed sizes when driving this
    # from a dataloader with variable-length audio, to avoid per-batch recompiles.

    # Zero-pad B and T (zeros do not change the sum), then lane-pack:
    # (B_pad, Tp_pad*pack, U) -> (B_pad, Tp_pad, pack*U): `pack` consecutive
    # frames share one 128-lane row, so the kernel streams lane-dense vregs.
    if (B_pad, T_frames_pad) != (B, T):
        feats = jnp.pad(feats, ((0, B_pad - B), (0, T_frames_pad - T), (0, 0)))
    feats = feats.reshape(B_pad, Tp_pad, lane_w)

    chunk_rows = _pick_chunk_rows(t_rows)
    n_chunks = t_rows // chunk_rows
    kernel = functools.partial(_stream_sum_kernel,
                               chunk_rows=chunk_rows, n_chunks=n_chunks)

    grid = (n_splits, B_pad // b_tile, t_tiles)

    psums = pl.pallas_call(
        kernel,
        out_shape=jax.ShapeDtypeStruct((n_splits, B_pad, lane_w), jnp.float32),
        grid_spec=pltpu.PrefetchScalarGridSpec(
            num_scalar_prefetch=0,
            grid=grid,
            in_specs=[
                pl.BlockSpec((b_tile, t_rows, lane_w),
                             lambda s, i, t: (i, s * t_tiles + t, 0)),
            ],
            out_specs=pl.BlockSpec((1, b_tile, lane_w),
                                   lambda s, i, t: (s, i, 0)),
            scratch_shapes=[pltpu.VMEM((b_tile, lane_w), jnp.float32)],
        ),
        compiler_params=pltpu.CompilerParams(
            dimension_semantics=("parallel", "parallel", "arbitrary"),
            vmem_limit_bytes=32 * 1024 * 1024,   # tiles are ~2-4 MiB double-buffered
        ),
    )(feats)

    # ---- tiny epilogue in plain JAX (mean, fused head, CE) ------------------
    total = jnp.sum(psums, axis=0)[:B]               # combine T-splits -> (B, lane_w)
    if pack > 1:
        total = total.reshape(B, pack, U).sum(axis=1)  # fold lanes back -> (B, U)
    pooled = total / jnp.float32(T)                  # mean over the padded length T

    w_fused = (wc @ wm).astype(jnp.float32)          # (U, C)
    b_fused = (bc @ wm + bm).astype(jnp.float32)     # (C,)
    logits = pooled @ w_fused + b_fused[None, :]     # "predicted"

    logp = jax.nn.log_softmax(logits, axis=-1)
    labels = labels.astype(jnp.int32)
    nll = -jnp.take_along_axis(logp, labels[:, None], axis=-1)[:, 0]
    loss = jnp.mean(nll)                             # nn.CrossEntropyLoss (mean)
    predicted_classid = jnp.argmax(logits, axis=-1)  # .max(dim=-1).indices
    return loss, logits, predicted_classid


def _reference_forward(features_padded, labels, wc, bc, wm, bm):
    """Pure-JAX reference (un-fused, same op order as the torch module)."""
    hidden = jnp.einsum('btu,uh->bth', features_padded, wc,
                        preferred_element_type=jnp.float32) + bc[None, None, :]
    pooled = jnp.mean(hidden, axis=1)
    logits = pooled @ wm + bm[None, :]
    logp = jax.nn.log_softmax(logits, axis=-1)
    nll = -jnp.take_along_axis(logp, labels[:, None], axis=-1)[:, 0]
    return jnp.mean(nll), logits, jnp.argmax(logits, axis=-1)


if __name__ == "__main__":
    key = jax.random.PRNGKey(0)
    k_feat, k_wc, k_bc, k_wm, k_bm, k_feat2 = jax.random.split(key, 6)

    # Shapes consistent with the module:
    #   upstream_dim U = 32, modelrc['input_dim'] H = 32, num_class C = 4
    #   batch B = 2, variable-length utterances padded to T = 8
    B, T, U, H, C = 2, 8, 32, 32, 4

    # Simulate the list of unpadded features + pad_sequence(batch_first=True).
    lengths = [8, 6]
    raw = jax.random.normal(k_feat, (B, T, U), dtype=jnp.float32)
    time_idx = jnp.arange(T)[None, :, None]
    len_mask = time_idx < jnp.asarray(lengths)[:, None, None]
    features_padded = jnp.where(len_mask, raw, 0.0)

    labels = jnp.array([1, 3], dtype=jnp.int32)

    # Parameters kept in the transposed (in, out) layout for the fused head.
    wc = jax.random.uniform(k_wc, (U, H), jnp.float32, -1.0, 1.0) / jnp.sqrt(U)
    bc = jax.random.uniform(k_bc, (H,), jnp.float32, -1.0, 1.0) / jnp.sqrt(U)
    wm = jax.random.uniform(k_wm, (H, C), jnp.float32, -1.0, 1.0) / jnp.sqrt(H)
    bm = jax.random.uniform(k_bm, (C,), jnp.float32, -1.0, 1.0) / jnp.sqrt(H)

    # --- f32 streaming: check against the un-fused f32 reference -------------
    loss, logits, pred = emofilm_forward(features_padded, labels, wc, bc, wm, bm,
                                         stream_dtype=jnp.float32)
    jax.block_until_ready((loss, logits, pred))
    ref_loss, ref_logits, ref_pred = _reference_forward(
        features_padded, labels, wc, bc, wm, bm)
    assert jnp.allclose(logits, ref_logits, atol=1e-5), "logits mismatch (f32)"
    assert jnp.allclose(loss, ref_loss, atol=1e-5), "loss mismatch (f32)"
    assert jnp.array_equal(pred, ref_pred), "argmax mismatch (f32)"

    # --- default bf16 HBM streaming with f32 accumulation --------------------
    loss_b, logits_b, pred_b = emofilm_forward(features_padded, labels,
                                               wc, bc, wm, bm)
    jax.block_until_ready((loss_b, logits_b, pred_b))
    feat_q = features_padded.astype(jnp.bfloat16).astype(jnp.float32)
    ref_loss_b, ref_logits_b, ref_pred_b = _reference_forward(
        feat_q, labels, wc, bc, wm, bm)
    assert jnp.allclose(logits_b, ref_logits_b, atol=1e-4), "logits mismatch (bf16)"
    assert jnp.allclose(loss_b, ref_loss_b, atol=1e-4), "loss mismatch (bf16)"
    assert jnp.array_equal(pred_b, ref_pred_b), "argmax mismatch (bf16)"

    # --- longer sequence: exercises multi-tile T grid, the chunked fori_loop
    #     in-tile reduction and the 2-way T-split combine ----------------------
    T_big = 5000
    lengths_big = [5000, 4500]
    raw_big = jax.random.normal(k_feat2, (B, T_big, U), dtype=jnp.float32)
    mask_big = jnp.arange(T_big)[None, :, None] < jnp.asarray(lengths_big)[:, None, None]
    feats_big = jnp.where(mask_big, raw_big, 0.0)

    loss_l, logits_l, pred_l = emofilm_forward(feats_big, labels, wc, bc, wm, bm)
    jax.block_until_ready((loss_l, logits_l, pred_l))
    feat_big_q = feats_big.astype(jnp.bfloat16).astype(jnp.float32)
    ref_loss_l, ref_logits_l, ref_pred_l = _reference_forward(
        feat_big_q, labels, wc, bc, wm, bm)
    assert jnp.allclose(logits_l, ref_logits_l, atol=1e-4), "logits mismatch (long)"
    assert jnp.allclose(loss_l, ref_loss_l, atol=1e-4), "loss mismatch (long)"
    assert jnp.array_equal(pred_l, ref_pred_l), "argmax mismatch (long)"

    # TODO(synk): dataset/dataloader construction, accuracy/records bookkeeping
    # and file logging (log_records) are host-side bookkeeping, not kernel work.
    print("KERNEL_OK")
</pallas_src>

<mosaic_0001>
module attributes {stable_mosaic.version = 11 : i64} {
  func.func @_stream_sum_kernel(%arg0: i32, %arg1: i32, %arg2: i32, %arg3: memref<2x8x128xf32, #tpu.memory_space<vmem>>, %arg4: memref<1x2x128xf32, #tpu.memory_space<vmem>>, %arg5: memref<2x128xf32, #tpu.memory_space<vmem>>) attributes {dimension_semantics = [#tpu.dimension_semantics<parallel>, #tpu.dimension_semantics<parallel>, #tpu.dimension_semantics<arbitrary>], iteration_bounds = array<i64: 2, 1, 1>, scalar_prefetch = 0 : i64, scratch_operands = 1 : i64, tpu.core_type = #tpu.core_type<tc>, window_params = [{transform_indices = @transform_0, window_bounds = array<i64: 2, 8, 128>}, {transform_indices = @transform_1, window_bounds = array<i64: 1, 2, 128>}]} {
    %c0_i32 = arith.constant 0 : i32
    %0 = arith.cmpi eq, %arg2, %c0_i32 : i32
    %1 = arith.extui %0 : i1 to i32
    %c0_i32_0 = arith.constant 0 : i32
    %2 = arith.cmpi ne, %1, %c0_i32_0 : i32
    scf.if %2 {
      %cst_9 = arith.constant 0.000000e+00 : f32
      %11 = vector.broadcast %cst_9 : f32 to vector<2x128xf32>
      %c0_10 = arith.constant 0 : index
      %c0_11 = arith.constant 0 : index
      %12 = vector.load %arg5[%c0_10, %c0_11] : memref<2x128xf32, #tpu.memory_space<vmem>>, vector<2x128xf32>
      tpu.vector_store %arg5[%c0_10, %c0_11], %11 {strides = array<i32>} : memref<2x128xf32, #tpu.memory_space<vmem>>, vector<2x128xf32>,
    } else {
    }
    %c0 = arith.constant 0 : index
    %c0_1 = arith.constant 0 : index
    %3 = vector.load %arg5[%c0, %c0_1] : memref<2x128xf32, #tpu.memory_space<vmem>>, vector<2x128xf32>
    %c0_2 = arith.constant 0 : index
    %c0_3 = arith.constant 0 : index
    %c0_4 = arith.constant 0 : index
    %4 = vector.load %arg3[%c0_2, %c0_3, %c0_4] : memref<2x8x128xf32, #tpu.memory_space<vmem>>, vector<2x8x128xf32>
    %cst = arith.constant dense<0.000000e+00> : vector<2x128xf32>
    %5 = vector.multi_reduction <add>, %4, %cst [1] : vector<2x8x128xf32> to vector<2x128xf32>
    %6 = arith.addf %3, %5 : vector<2x128xf32>
    %c0_5 = arith.constant 0 : index
    %c0_6 = arith.constant 0 : index
    %7 = vector.load %arg5[%c0_5, %c0_6] : memref<2x128xf32, #tpu.memory_space<vmem>>, vector<2x128xf32>
    tpu.vector_store %arg5[%c0_5, %c0_6], %6 {strides = array<i32>} : memref<2x128xf32, #tpu.memory_space<vmem>>, vector<2x128xf32>,
    %c0_i32_7 = arith.constant 0 : i32
    %8 = arith.cmpi eq, %arg2, %c0_i32_7 : i32
    %9 = arith.extui %8 : i1 to i32
    %c0_i32_8 = arith.constant 0 : i32
    %10 = arith.cmpi ne, %9, %c0_i32_8 : i32
    scf.if %10 {
      %c0_9 = arith.constant 0 : index
      %c0_10 = arith.constant 0 : index
      %11 = vector.load %arg5[%c0_9, %c0_10] : memref<2x128xf32, #tpu.memory_space<vmem>>, vector<2x128xf32>
      %c0_11 = arith.constant 0 : index
      %c0_12 = arith.constant 0 : index
      %c0_13 = arith.constant 0 : index
      %12 = vector.load %arg4[%c0_11, %c0_12, %c0_13] : memref<1x2x128xf32, #tpu.memory_space<vmem>>, vector<1x2x128xf32>
      %13 = vector.shape_cast %12 : vector<1x2x128xf32> to vector<2x128xf32>
      %14 = vector.shape_cast %11 : vector<2x128xf32> to vector<1x2x128xf32>
      tpu.vector_store %arg4[%c0_11, %c0_12, %c0_13], %14 {strides = array<i32>} : memref<1x2x128xf32, #tpu.memory_space<vmem>>, vector<1x2x128xf32>,
    } else {
    }
    return
  }
  func.func @transform_0(%arg0: i32, %arg1: i32, %arg2: i32) -> (i32, i32, i32) {
    %c1_i32 = arith.constant 1 : i32
    %0 = arith.muli %arg0, %c1_i32 : i32
    %1 = arith.addi %0, %arg2 : i32
    %c0_i32 = arith.constant 0 : i32
    %c0_i32_0 = arith.constant 0 : i32
    return %arg1, %1, %c0_i32 : i32, i32, i32
  }
  func.func @transform_1(%arg0: i32, %arg1: i32, %arg2: i32) -> (i32, i32, i32) {
    %c0_i32 = arith.constant 0 : i32
    %c0_i32_0 = arith.constant 0 : i32
    return %arg0, %arg1, %c0_i32 : i32, i32, i32
  }
}

</mosaic_0001>

<bundles_post_ra>
// kernel: tpu_custom_call.1
= control target key start
LH: loop header
LB: loop body
LE: loop exit
PB: predicated region body
PF: predicated region fallthrough
CT: control target
= control target key end

     0   :  { %6 = vsyncpa [#allocation4], 0  ;;  %s678_s0 = inlined_call_operand.hbm [shape: f32[2,16,128], index: 0, kind: input, shape index: {}]   ;;  %s679_s1 = inlined_call_operand.hbm [shape: f32[2,2,128], index: 1, kind: output, shape index: {}]  }
   0x1   :  { %8 = vsyncpa [#allocation4 + $0x1], 0 }
   0x2   :  { %9 = vsyncpa [#allocation5], 0 }
   0x3   :  { %11 = vsyncpa [#allocation5 + $0x1], 0  ;;  %s506_s6 = smov 0   ;;  %s508_s7 = smov 0  }
   0x4   :  { %s510_s8 = smov 0   ;;  %s512_s9 = smov 0  }
   0x5   :  { %s514_s10 = smov 0   ;;  %s516_s11 = smov 0  }
   0x6 LB: > { %s297_s12 = sadd.s32 4294967295, %s488_s11   ;;  %s298_s13 = sadd.s32 4294967294, %s488_s11   ;;  %s488_s11 = sphi %s516_s11, %s17_s11   ;;  %s484_s10 = sphi %s514_s10, %s693_s10   ;;  %s480_s9 = sphi %s512_s9, %s692_s9   ;;  %s476_s8 = sphi %s510_s8, %s691_s8   ;;  %s472_s7 = sphi %s508_s7, %s690_s7   ;;  %s468_s6 = sphi %s506_s6, %s689_s6  }
   0x7   : > { %s36_s14 = sadd.s32 1, %s484_s10  ;;  %s47_s15 = sadd.s32 1, %s476_s8 }
   0x8   : > { %p38_p0 = scmp.ge.s32.totalorder %s36_s14, 2  ;;  %p54_p1 = scmp.ne.s32.totalorder %s476_s8, %s472_s7 }
   0x9   : > { %p55_p2 = scmp.eq.s32.totalorder %s488_s11, 0  ;;  %p60_p3 = scmp.ne.s32.totalorder %s472_s7, %s468_s6 }
   0xa   : > { %s695_s14 = smov (%p38_p0, %s36_s14), 0  ;;  %p61_p5 = scmp.eq.s32.totalorder %s297_s12, 0 }
   0xb   : > { %p547_p4 = por %p55_p2, %p54_p1  ;;  %s43_s17 = ssub.s32 %s484_s10, %s695_s14 }
   0xc   : > { %p86_p6 = scmp.eq.s32.totalorder %s297_s12, 1  ;;  %p45_p7 = scmp.eq.s32.totalorder %s43_s17, 0 }
   0xd   : > { %p553_p8 = por %p61_p5, %p60_p3  ;;  %p92_p10 = scmp.eq.s32.totalorder %s298_s13, 1 }
   0xe   : > { %p557_p9 = por %p86_p6, %p54_p1  ;;  %p322_p13 = scmp.lt.s32.totalorder %s488_s11, 2 }
   0xf   : > { %s562_s20 = scalar_select %p45_p7, %s476_s8, %s47_s15  }
  0x10   : > { %s683_s19 = scalar_select %p557_p9, 1, 0 }
  0x11   : > { %p564_p11 = por %p92_p10, %p60_p3  ;;  %s112_s22 = sand.u32 1, %s476_s8  }
  0x12   : > { %s301_s23 = sshll.u32 %s112_s22, 4  ;;  %s302_s24 = sshll.u32 %s484_s10, 7 }
  0x13   : > { %s684_s21 = scalar_select %p564_p11, 1, 0 }
  0x14   : > { %s575_s27 = scalar_lea.hbm %s678_s0, %s302_s24  ;;  %s116_s28 = scalar_lea.vmem [#allocation3], %s301_s23 }
  0x15   : > { %s126_s29 = sshll.u32 %s116_s28, 4  ;;  %p581_p0 = pnand %p322_p13, %p547_p4  ;;  %s577_s29 = int_to_ptr.vmem [resolvable:$true] %s126_s29 }
  0x16   : > { %s585_s2 = scalar_lea.sflag [#allocation4], %s112_s22  ;;  %s376_s3 = scalar_lea.hbm %s575_s27, 256 }
  0x17   : > { %p377_p1 = scmp.ne.s32.totalorder %s575_s27, %s376_s3  ;;  %p378_p2 = pneg %p581_p0 }
  0x18   : > { %s381_s12 = scalar_lea.hbm %s678_s0, 512  ;;  %p382_p4 = scmp.lt.u32.totalorder %s575_s27, %s678_s0 }
  0x19   : > { %p379_p3 = pnand %p378_p2, %p377_p1  ;;  %p383_p6 = scmp.lt.u32.totalorder %s381_s12, %s376_s3 }
  0x1a   : > { %p385_p10 = scmp.lt.u32.totalorder %s376_s3, %s575_s27 }
  0x1b   : > { %p380_p5 = pneg %p379_p3  ;;  %p384_p7 = por %p383_p6, %p382_p4 }
  0x1d   : > { %p386_p13 = por %p385_p10, %p384_p7 }
  0x1f   : > { %p387_p12 = pnand %p386_p13, %p380_p5 }
  0x21   : > { %390 = shalt.err (!%p387_p12)
}
  0x22   : > { %s391_s16 = scalar_lea.vmem %s577_s29, 256  ;;  %s490_s17 = smov [#allocation3]  }
  0x23   : > { %p392_p1 = scmp.ne.s32.totalorder %s577_s29, %s391_s16  ;;  %s396_s22 = sshll.u32 %s490_s17, 4  ;;  %s397_s22 = int_to_ptr.vmem [resolvable:$false] %s396_s22 }
  0x24   : > { %s398_s23 = scalar_lea.vmem %s397_s22, 512  ;;  %p399_p9 = scmp.lt.s32.totalorder %s577_s29, %s397_s22 }
  0x25   : > { %p394_p3 = pnand %p392_p1, %p378_p2  ;;  %p400_p4 = scmp.lt.s32.totalorder %s398_s23, %s391_s16 }
  0x27   : > { %p395_p11 = pneg %p394_p3  ;;  %p401_p6 = por %p400_p4, %p399_p9 }
  0x29   : > { %p402_p7 = pnand %p401_p6, %p395_p11 }
  0x2b   : > { %405 = shalt.err (!%p402_p7)
}
  0x2c   : > { %s491_s24 = smov 256   ;;  %s492_s25 = smov 128  }
  0x2d   : > { %s493_s26 = smov 8   ;;  %p303_p12 = scmp.ge.s32.totalorder %s488_s11, 1 }
  0x2e   : > { %317 = dma.hbm_to_vmem [thread:$0]  (!%p581_p0), %s575_s27, 256, %s577_s29, %s585_s2, %s491_s24, %s492_s25, %s493_s26  }
  0x2f   : > { %p134_p2 = scmp.lt.s32.totalorder %s488_s11, 3 }
  0x31   : > { %p135_p5 = pnand %p303_p12, %p134_p2 }
  0x32   : > { %s616_s28 = sand.u32 (!%p135_p5), 1, %s472_s7  }
  0x33   : > { %138 = sbr.rel (%p135_p5) target bundleno = 97 (0x61), region = 24  ;;  %s304_s3 = sshll.u32 (!%p135_p5), %s616_s28, 4 }
  0x34   : > { %s141_s4 = scalar_lea.sflag (!%p135_p5), [#allocation4], %s616_s28  ;;  %s144_s5 = scalar_lea.vmem (!%p135_p5), [#allocation3], %s304_s3 }
  0x3a   : > { %459 = dma.done.wait (%p553_p8), %s141_s4, 256  }
  0x3b   : > { %461 = vsyncadd (%p553_p8), %s141_s4, 4294967040  ;;  %v494_v0 = vmov 0.0   ;;  %v171_v1 = vld [vmem:[%s144_s5] sm:$0xff]  ;;  %v172_v2 = vld [vmem:[%s144_s5 + $0x8] sm:$0xff]  ;;  %vm187_vm0 = vcmask 1041409   ;;  %s305_s18 = sshll.u32 %s616_s28, 1 }
  0x3c   : > { %169 = vst [vmem:[#allocation2] sm:$0x3] %v494_v0  ;;  %v173_v3 = vrot.slane %v171_v1, 4  ;;  %v179_v4 = vrot.slane %v172_v2, 4  ;;  %s162_s27 = scalar_lea.vmem [#allocation6], %s305_s18  ;;  %s307_s30 = sshll.u32 %s480_s9, 5 }
  0x3d   : > { %s212_s29 = sshll.u32 %s162_s27, 4  ;;  %s631_s13 = scalar_lea.hbm %s679_s1, %s307_s30  ;;  %s626_s29 = int_to_ptr.vmem [resolvable:$true] %s212_s29 }
  0x3e   : > { %v174_v5 = vadd.f32 %v173_v3, %v171_v1  ;;  %v180_v6 = vadd.f32 %v179_v4, %v172_v2  ;;  %s198_s15 = scalar_lea.sflag [#allocation5], %s616_s28  ;;  %s406_s16 = scalar_lea.vmem %s626_s29, 32 }
  0x3f   : > { %p407_p8 = scmp.ne.s32.totalorder %s626_s29, %s406_s16  ;;  %p686_p9 = scmp.ne.s32.totalorder %s683_s19, 0 }
  0x40   : > { %v175_v7 = vrot.slane %v174_v5, 2  ;;  %v181_v8 = vrot.slane %v180_v6, 2  ;;  %s495_s17 = smov [#allocation6]  }
  0x41   : > { %p408_p11 = pnand %p407_p8, %p686_p9  ;;  %s410_s9 = sshll.u32 %s495_s17, 4  ;;  %s411_s9 = int_to_ptr.vmem [resolvable:$false] %s410_s9 }
  0x42   : > { %v176_v9 = vadd.f32 %v175_v7, %v174_v5  ;;  %v182_v10 = vadd.f32 %v181_v8, %v180_v6  ;;  %s412_s22 = scalar_lea.vmem %s411_s9, 64  ;;  %p413_p10 = scmp.lt.s32.totalorder %s626_s29, %s411_s9 }
  0x43   : > { %v170_v13 = vld [vmem:[#allocation2] sm:$0x3]  ;;  %p409_p0 = pneg %p408_p11  ;;  %p414_p13 = scmp.lt.s32.totalorder %s412_s22, %s406_s16 }
  0x44   : > { %v177_v11 = vrot.slane %v176_v9, 1  ;;  %v183_v12 = vrot.slane %v182_v10, 1 }
  0x45   : > { %p415_p1 = por %p414_p13, %p413_p10 }
  0x46   : > { %v178_v14 = vadd.f32 %v177_v11, %v176_v9  ;;  %v184_v15 = vadd.f32 %v183_v12, %v182_v10 }
  0x47   : > { %p416_p3 = pnand %p415_p1, %p409_p0 }
  0x48   : > { %v188_v16 = vsel %vm187_vm0, %v184_v15, %v178_v14 }
  0x49   : > { %v190_v17 = vadd.f32 %v188_v16, %v170_v13 }
  0x4b   : > { %191 = vst [vmem:[#allocation2] sm:$0x3] %v190_v17 }
  0x52   : > { %v195_v18 = vld [vmem:[#allocation2] sm:$0x3] }
  0x53   : > { %196 = vst [vmem:[%s162_s27] sm:$0x3] %v195_v18 }
  0x54   : > { %419 = shalt.err (!%p416_p3)
}
  0x55   : > { %s420_s23 = scalar_lea.hbm %s631_s13, 32  ;;  %s424_s26 = scalar_lea.hbm %s679_s1, 64 }
  0x56   : > { %p421_p4 = scmp.ne.s32.totalorder %s631_s13, %s420_s23  ;;  %p425_p12 = scmp.lt.u32.totalorder %s631_s13, %s679_s1 }
  0x57   : > { %p426_p2 = scmp.lt.u32.totalorder %s424_s26, %s420_s23  ;;  %p428_p8 = scmp.lt.u32.totalorder %s420_s23, %s631_s13 }
  0x58   : > { %p422_p6 = pnand %p421_p4, %p686_p9 }
  0x59   : > { %p427_p5 = por %p426_p2, %p425_p12 }
  0x5a   : > { %p423_p7 = pneg %p422_p6 }
  0x5b   : > { %p429_p11 = por %p428_p8, %p427_p5 }
  0x5d   : > { %p430_p0 = pnand %p429_p11, %p423_p7 }
  0x5f   : > { %433 = shalt.err (!%p430_p0)
}
  0x60   : > { %312 = dma.vmem_to_hbm [thread:$0]  (%p686_p9), %s626_s29, 32, %s631_s13, %s198_s15  }
  0x61 PF: > { %s224_s4 = sand.u32 1, %s468_s6   ;;  %p687_p10 = scmp.ne.s32.totalorder %s684_s21, 0 }
  0x62   : > { %p688_p13 = scmp.ge.s32.totalorder %s488_s11, 2  ;;  %s225_s5 = scalar_lea.sflag [#allocation5], %s224_s4 }
  0x64   : > { %p319_p1 = pnand %p688_p13, %p687_p10 }
  0x66   : > { %463 = dma.done.wait (!%p319_p1), %s225_s5, 32  }
  0x67   : > { %465 = vsyncadd (!%p319_p1), %s225_s5, 4294967264  ;;  %s17_s11 = sadd.s32 1, %s488_s11   ;;  %s689_s6 = smov %s472_s7 }
  0x68   : > { %p14_p3 = scmp.ge.s32.totalorder %s17_s11, 4   ;;  %s690_s7 = smov %s476_s8 }
  0x69   : > { %s691_s8 = smov %s562_s20  ;;  %s692_s9 = smov %s484_s10 }
  0x6a   : > { %s693_s10 = smov %s695_s14  ;;  %16 = sbr.rel (!%p14_p3) target bundleno = 6 (0x6), region = 77 }
  0x71   :  { %230 = vsyncpa [#allocation4], 1 }
  0x72   :  { %232 = vsyncpa [#allocation4 + $0x1], 1 }
  0x73   :  { %233 = vsyncpa [#allocation5], 1 }
  0x74   :  { %235 = vsyncpa [#allocation5 + $0x1], 1 }

</bundles_post_ra>
